<compile_context>
chip_gen: v7x
topology: tpu7x:2x2x1
jax: 0.10.0
libtpu: 0.0.40
codegen_flags: <defaults>
</compile_context>

<pallas_src>
import jax
import jax.numpy as jnp
from jax.experimental import pallas as pl
from jax.experimental.pallas import tpu as pltpu

hidden_size = 8
input_size = 32    # stands in for len(words)
output_size = 4    # stands in for len(classes)

LANE = 128         # TPU lane width; padded feature dim for lane-dense compute
NEG_BIG = -1e30    # pad-logit bias so pad lanes contribute 0 to softmax


def mlp_softmax_kernel(x_ref, w1_ref, b1_ref, w2_ref, b2_ref, w3_ref, b3_ref, o_ref):
    x = x_ref[...].astype(jnp.float32)

    # fc1 + relu  (W1 padded to [input_size, 128]; pad cols -> 0 after relu)
    h1 = jnp.dot(x, w1_ref[...], preferred_element_type=jnp.float32) + b1_ref[...]
    h1 = jnp.maximum(h1, 0.0)

    # fc2 + relu  (W2 padded to [128, 128], zeros outside the real 8x8 block)
    h2 = jnp.dot(h1, w2_ref[...], preferred_element_type=jnp.float32) + b2_ref[...]
    h2 = jnp.maximum(h2, 0.0)

    # fc3  (W3 padded to [128, 128]; pad-lane bias = -1e30 -> softmax weight 0)
    logits = jnp.dot(h2, w3_ref[...], preferred_element_type=jnp.float32) + b3_ref[...]

    # softmax over dim=1 (last axis); pad lanes give exp(-1e30 - m) == 0.
    # Keep full 128-lane intermediates (same vreg count as 4 lanes); only the
    # final store is narrowed to the real class width.
    m = jnp.max(logits, axis=-1, keepdims=True)
    e = jnp.exp(logits - m)
    denom = jnp.sum(e, axis=-1, keepdims=True)
    probs = e / denom                           # exact divide (well-normalized rows)
    o_ref[...] = probs[:, :output_size].astype(o_ref.dtype)


def _round_up(n, m):
    return ((n + m - 1) // m) * m


def _pack_params(params):
    """Pad weights/biases to lane width 128 (lane-dense everywhere).
    fc3 bias pad lanes are -1e30 so they drop out of the softmax."""
    w1p = jnp.zeros((input_size, LANE), jnp.float32).at[:, :hidden_size].set(params["w1"])
    b1p = jnp.zeros((1, LANE), jnp.float32).at[:, :hidden_size].set(params["b1"])
    w2p = jnp.zeros((LANE, LANE), jnp.float32).at[:hidden_size, :hidden_size].set(params["w2"])
    b2p = jnp.zeros((1, LANE), jnp.float32).at[:, :hidden_size].set(params["b2"])
    w3p = jnp.zeros((LANE, LANE), jnp.float32).at[:hidden_size, :output_size].set(params["w3"])
    b3p = jnp.full((1, LANE), NEG_BIG, jnp.float32).at[:, :output_size].set(params["b3"])
    return w1p, b1p, w2p, b2p, w3p, b3p


def neural_network_forward(x, params, *, tile_b=2048):
    """x: [B, input_size] float32 or bf16. Returns softmax probs [B, output_size]."""
    B, F = x.shape
    assert F == input_size

    # v7x: guarantee >= 2 grid steps so ("parallel",) can shard the batch
    # across both TensorCores (no-op on v5e/v6e, single TC).
    tile_b = min(tile_b, _round_up(pl.cdiv(B, 2), 8))
    tile_b = max(8, _round_up(tile_b, 8))

    # No wrapper-side pad / slice: Pallas masks the partial final block
    # (garbage rows are computed but never written back).
    grid = (pl.cdiv(B, tile_b),)

    w1p, b1p, w2p, b2p, w3p, b3p = _pack_params(params)

    def const_spec(shape):
        # Constant block index -> DMA'd once, resident across all grid steps.
        return pl.BlockSpec(shape, lambda i: (0, 0))

    out = pl.pallas_call(
        mlp_softmax_kernel,
        out_shape=jax.ShapeDtypeStruct((B, output_size), jnp.float32),
        grid=grid,
        in_specs=[
            pl.BlockSpec((tile_b, input_size), lambda i: (i, 0)),  # x: tiled over batch
            const_spec((input_size, LANE)),                        # w1 (resident)
            const_spec((1, LANE)),                                 # b1
            const_spec((LANE, LANE)),                              # w2
            const_spec((1, LANE)),                                 # b2
            const_spec((LANE, LANE)),                              # w3
            const_spec((1, LANE)),                                 # b3
        ],
        # Real class width only: 16 B/row instead of a 512 B padded slab.
        out_specs=pl.BlockSpec((tile_b, output_size), lambda i: (i, 0)),
        compiler_params=pltpu.CompilerParams(
            dimension_semantics=("parallel",),       # megacore-shard batch on v7x
            vmem_limit_bytes=32 * 1024 * 1024,       # plenty of headroom on all gens
        ),
    )(x, w1p, b1p, w2p, b2p, w3p, b3p)

    return out


def init_params(key):
    """Deterministic init mimicking nn.Linear default (uniform +-1/sqrt(fan_in)).
    Weights stored as [in, out] (PyTorch weight transposed)."""
    ks = jax.random.split(key, 6)

    def linear(kw, kb, fan_in, fan_out):
        bound = 1.0 / jnp.sqrt(jnp.float32(fan_in))
        w = jax.random.uniform(kw, (fan_in, fan_out), jnp.float32, -bound, bound)
        b = jax.random.uniform(kb, (1, fan_out), jnp.float32, -bound, bound)
        return w, b

    w1, b1 = linear(ks[0], ks[1], input_size, hidden_size)
    w2, b2 = linear(ks[2], ks[3], hidden_size, hidden_size)
    w3, b3 = linear(ks[4], ks[5], hidden_size, output_size)
    return {"w1": w1, "b1": b1, "w2": w2, "b2": b2, "w3": w3, "b3": b3}


def reference_forward(x, p):
    h1 = jnp.maximum(x @ p["w1"] + p["b1"], 0.0)
    h2 = jnp.maximum(h1 @ p["w2"] + p["b2"], 0.0)
    logits = h2 @ p["w3"] + p["b3"]
    return jax.nn.softmax(logits, axis=1)


if __name__ == "__main__":
    key = jax.random.PRNGKey(0)
    k_x1, k_x2, k_p = jax.random.split(key, 3)
    params = init_params(k_p)

    # Small-shape check (B=8, single grid step, exact block fit).
    B1 = 8
    x1 = jax.random.normal(k_x1, (B1, input_size), jnp.float32)
    out1 = jax.block_until_ready(neural_network_forward(x1, params))
    ref1 = reference_forward(x1, params)
    assert out1.shape == (B1, output_size)
    assert jnp.allclose(out1, ref1, atol=2e-3, rtol=2e-3), "mismatch vs JAX reference (B=8)"
    assert jnp.allclose(jnp.sum(out1, axis=1), jnp.ones((B1,)), atol=1e-3)

    # Non-multiple-of-tile batch: exercises the 2-step parallel grid and the
    # masked partial final block (no wrapper pad / slice anymore).
    B2 = 100
    x2 = jax.random.normal(k_x2, (B2, input_size), jnp.float32)
    out2 = jax.block_until_ready(neural_network_forward(x2, params))
    ref2 = reference_forward(x2, params)
    assert out2.shape == (B2, output_size)
    assert jnp.allclose(out2, ref2, atol=2e-3, rtol=2e-3), "mismatch vs JAX reference (B=100)"
    assert jnp.allclose(jnp.sum(out2, axis=1), jnp.ones((B2,)), atol=1e-3)

    print("KERNEL_OK")
</pallas_src>

<mosaic_0001>
module attributes {stable_mosaic.version = 11 : i64} {
  func.func @mlp_softmax_kernel(%arg0: i32, %arg1: memref<8x32xf32, #tpu.memory_space<vmem>>, %arg2: memref<32x128xf32, #tpu.memory_space<vmem>>, %arg3: memref<1x128xf32, #tpu.memory_space<vmem>>, %arg4: memref<128x128xf32, #tpu.memory_space<vmem>>, %arg5: memref<1x128xf32, #tpu.memory_space<vmem>>, %arg6: memref<128x128xf32, #tpu.memory_space<vmem>>, %arg7: memref<1x128xf32, #tpu.memory_space<vmem>>, %arg8: memref<8x4xf32, #tpu.memory_space<vmem>>) attributes {dimension_semantics = [#tpu.dimension_semantics<parallel>], iteration_bounds = array<i64: 1>, scalar_prefetch = 0 : i64, scratch_operands = 0 : i64, tpu.core_type = #tpu.core_type<tc>, window_params = [{transform_indices = @transform_0, window_bounds = array<i64: 8, 32>}, {pipeline_mode = #tpu.pipeline_mode<synchronous>, transform_indices = @transform_1, window_bounds = array<i64: 32, 128>}, {pipeline_mode = #tpu.pipeline_mode<synchronous>, transform_indices = @transform_2, window_bounds = array<i64: 1, 128>}, {pipeline_mode = #tpu.pipeline_mode<synchronous>, transform_indices = @transform_3, window_bounds = array<i64: 128, 128>}, {pipeline_mode = #tpu.pipeline_mode<synchronous>, transform_indices = @transform_4, window_bounds = array<i64: 1, 128>}, {pipeline_mode = #tpu.pipeline_mode<synchronous>, transform_indices = @transform_5, window_bounds = array<i64: 128, 128>}, {pipeline_mode = #tpu.pipeline_mode<synchronous>, transform_indices = @transform_6, window_bounds = array<i64: 1, 128>}, {transform_indices = @transform_7, window_bounds = array<i64: 8, 4>}]} {
    %c0 = arith.constant 0 : index
    %c0_0 = arith.constant 0 : index
    %0 = vector.load %arg1[%c0, %c0_0] : memref<8x32xf32, #tpu.memory_space<vmem>>, vector<8x32xf32>
    %c0_1 = arith.constant 0 : index
    %c0_2 = arith.constant 0 : index
    %1 = vector.load %arg2[%c0_1, %c0_2] : memref<32x128xf32, #tpu.memory_space<vmem>>, vector<32x128xf32>
    %cst = arith.constant dense<0.000000e+00> : vector<8x128xf32>
    %2 = tpu.matmul %0, %1, %cst {dimension_numbers = #tpu.dot_dimension_numbers<[1], [0], [0], [1], [0, 0, 1, 1], [], []>} : vector<8x32xf32>, vector<32x128xf32>, vector<8x128xf32> -> vector<8x128xf32>
    %c0_3 = arith.constant 0 : index
    %c0_4 = arith.constant 0 : index
    %3 = vector.load %arg3[%c0_3, %c0_4] : memref<1x128xf32, #tpu.memory_space<vmem>>, vector<1x128xf32>
    %4 = vector.broadcast %3 : vector<1x128xf32> to vector<8x128xf32>
    %5 = arith.addf %2, %4 : vector<8x128xf32>
    %cst_5 = arith.constant 0.000000e+00 : f32
    %6 = vector.broadcast %cst_5 : f32 to vector<8x128xf32>
    %7 = arith.maximumf %5, %6 : vector<8x128xf32>
    %c0_6 = arith.constant 0 : index
    %c0_7 = arith.constant 0 : index
    %8 = vector.load %arg4[%c0_6, %c0_7] : memref<128x128xf32, #tpu.memory_space<vmem>>, vector<128x128xf32>
    %cst_8 = arith.constant dense<0.000000e+00> : vector<8x128xf32>
    %9 = tpu.matmul %7, %8, %cst_8 {dimension_numbers = #tpu.dot_dimension_numbers<[1], [0], [0], [1], [0, 0, 1, 1], [], []>} : vector<8x128xf32>, vector<128x128xf32>, vector<8x128xf32> -> vector<8x128xf32>
    %c0_9 = arith.constant 0 : index
    %c0_10 = arith.constant 0 : index
    %10 = vector.load %arg5[%c0_9, %c0_10] : memref<1x128xf32, #tpu.memory_space<vmem>>, vector<1x128xf32>
    %11 = vector.broadcast %10 : vector<1x128xf32> to vector<8x128xf32>
    %12 = arith.addf %9, %11 : vector<8x128xf32>
    %cst_11 = arith.constant 0.000000e+00 : f32
    %13 = vector.broadcast %cst_11 : f32 to vector<8x128xf32>
    %14 = arith.maximumf %12, %13 : vector<8x128xf32>
    %c0_12 = arith.constant 0 : index
    %c0_13 = arith.constant 0 : index
    %15 = vector.load %arg6[%c0_12, %c0_13] : memref<128x128xf32, #tpu.memory_space<vmem>>, vector<128x128xf32>
    %cst_14 = arith.constant dense<0.000000e+00> : vector<8x128xf32>
    %16 = tpu.matmul %14, %15, %cst_14 {dimension_numbers = #tpu.dot_dimension_numbers<[1], [0], [0], [1], [0, 0, 1, 1], [], []>} : vector<8x128xf32>, vector<128x128xf32>, vector<8x128xf32> -> vector<8x128xf32>
    %c0_15 = arith.constant 0 : index
    %c0_16 = arith.constant 0 : index
    %17 = vector.load %arg7[%c0_15, %c0_16] : memref<1x128xf32, #tpu.memory_space<vmem>>, vector<1x128xf32>
    %18 = vector.broadcast %17 : vector<1x128xf32> to vector<8x128xf32>
    %19 = arith.addf %16, %18 : vector<8x128xf32>
    %cst_17 = arith.constant dense<0xFF800000> : vector<8xf32>
    %20 = vector.multi_reduction <maximumf>, %19, %cst_17 [1] : vector<8x128xf32> to vector<8xf32>
    %21 = vector.shape_cast %20 : vector<8xf32> to vector<8x1xf32>
    %22 = vector.broadcast %21 : vector<8x1xf32> to vector<8x128xf32>
    %23 = arith.subf %19, %22 : vector<8x128xf32>
    %24 = math.exp %23 : vector<8x128xf32>
    %cst_18 = arith.constant dense<0.000000e+00> : vector<8xf32>
    %25 = vector.multi_reduction <add>, %24, %cst_18 [1] : vector<8x128xf32> to vector<8xf32>
    %26 = vector.shape_cast %25 : vector<8xf32> to vector<8x1xf32>
    %27 = vector.broadcast %26 : vector<8x1xf32> to vector<8x128xf32>
    %28 = arith.divf %24, %27 : vector<8x128xf32>
    %29 = vector.extract_strided_slice %28 {offsets = [0, 0], sizes = [8, 4], strides = [1, 1]} : vector<8x128xf32> to vector<8x4xf32>
    %c0_19 = arith.constant 0 : index
    %c0_20 = arith.constant 0 : index
    %30 = vector.load %arg8[%c0_19, %c0_20] : memref<8x4xf32, #tpu.memory_space<vmem>>, vector<8x4xf32>
    tpu.vector_store %arg8[%c0_19, %c0_20], %29 {strides = array<i32>} : memref<8x4xf32, #tpu.memory_space<vmem>>, vector<8x4xf32>,
    return
  }
  func.func @transform_0(%arg0: i32) -> (i32, i32) {
    %c0_i32 = arith.constant 0 : i32
    %c0_i32_0 = arith.constant 0 : i32
    return %arg0, %c0_i32 : i32, i32
  }
  func.func @transform_1(%arg0: i32) -> (i32, i32) {
    %c0_i32 = arith.constant 0 : i32
    %c0_i32_0 = arith.constant 0 : i32
    %c0_i32_1 = arith.constant 0 : i32
    return %c0_i32, %c0_i32_0 : i32, i32
  }
  func.func @transform_2(%arg0: i32) -> (i32, i32) {
    %c0_i32 = arith.constant 0 : i32
    %c0_i32_0 = arith.constant 0 : i32
    %c0_i32_1 = arith.constant 0 : i32
    return %c0_i32, %c0_i32_0 : i32, i32
  }
  func.func @transform_3(%arg0: i32) -> (i32, i32) {
    %c0_i32 = arith.constant 0 : i32
    %c0_i32_0 = arith.constant 0 : i32
    %c0_i32_1 = arith.constant 0 : i32
    return %c0_i32, %c0_i32_0 : i32, i32
  }
  func.func @transform_4(%arg0: i32) -> (i32, i32) {
    %c0_i32 = arith.constant 0 : i32
    %c0_i32_0 = arith.constant 0 : i32
    %c0_i32_1 = arith.constant 0 : i32
    return %c0_i32, %c0_i32_0 : i32, i32
  }
  func.func @transform_5(%arg0: i32) -> (i32, i32) {
    %c0_i32 = arith.constant 0 : i32
    %c0_i32_0 = arith.constant 0 : i32
    %c0_i32_1 = arith.constant 0 : i32
    return %c0_i32, %c0_i32_0 : i32, i32
  }
  func.func @transform_6(%arg0: i32) -> (i32, i32) {
    %c0_i32 = arith.constant 0 : i32
    %c0_i32_0 = arith.constant 0 : i32
    %c0_i32_1 = arith.constant 0 : i32
    return %c0_i32, %c0_i32_0 : i32, i32
  }
  func.func @transform_7(%arg0: i32) -> (i32, i32) {
    %c0_i32 = arith.constant 0 : i32
    %c0_i32_0 = arith.constant 0 : i32
    return %arg0, %c0_i32 : i32, i32
  }
}

</mosaic_0001>

<bundles_post_ra>
// kernel: tpu_custom_call.1
= control target key start
LH: loop header
LB: loop body
LE: loop exit
PB: predicated region body
PF: predicated region fallthrough
CT: control target
= control target key end

     0   :  { %12 = vsyncpa [#allocation3], 0  ;;  %s795_s0 = inlined_call_operand.hbm [shape: f32[8,32], index: 0, kind: input, shape index: {}]   ;;  %s796_s1 = inlined_call_operand.hbm [shape: f32[32,128], index: 1, kind: input, shape index: {}]   ;;  %s797_s2 = inlined_call_operand.vmem [shape: f32[1,128], index: 2, kind: input, shape index: {}]   ;;  %s798_s3 = inlined_call_operand.hbm [shape: f32[128,128], index: 3, kind: input, shape index: {}]   ;;  %s799_s4 = inlined_call_operand.vmem [shape: f32[1,128], index: 4, kind: input, shape index: {}]   ;;  %s800_s5 = inlined_call_operand.hbm [shape: f32[128,128], index: 5, kind: input, shape index: {}]   ;;  %s801_s6 = inlined_call_operand.vmem [shape: f32[1,128], index: 6, kind: input, shape index: {}]   ;;  %s802_s7 = inlined_call_operand.vmem [shape: f32[8,4], index: 7, kind: output, shape index: {}]  }
   0x1   :  { %13 = vsyncpa [#allocation5], 0 }
   0x2   :  { %14 = vsyncpa [#allocation8], 0  ;;  %s656_s24 = smov [#allocation4]   ;;  %s562_s28 = scalar_lea.hbm %s796_s1, 512 }
   0x3   :  { %s30_s25 = sshll.u32 %s656_s24, 4  ;;  %p563_p0 = scmp.ne.s32.totalorder %s796_s1, %s562_s28  ;;  %s31_s25 = int_to_ptr.vmem [resolvable:$true] %s30_s25 }
   0x4   :  { %p566_p1 = scmp.lt.u32.totalorder %s562_s28, %s796_s1 }
   0x6   :  { %p568_p2 = pnand %p566_p1, %p563_p0 }
   0x8   :  { %571 = shalt.err (!%p568_p2)
}
   0x9   :  { %s572_s10 = scalar_lea.vmem %s31_s25, 512  ;;  %p577_p4 = scmp.lt.s32.totalorder %s31_s25, %s31_s25 }
   0xa   :  { %p573_p3 = scmp.ne.s32.totalorder %s31_s25, %s572_s10  ;;  %p578_p5 = scmp.lt.s32.totalorder %s572_s10, %s572_s10 }
   0xc   :  { %p579_p6 = por %p578_p5, %p577_p4 }
   0xe   :  { %p580_p7 = pnand %p579_p6, %p573_p3 }
  0x10   :  { %583 = shalt.err (!%p580_p7)
}
  0x11   :  { %s657_s11 = smov 128   ;;  %s658_s12 = smov 8  }
  0x12   :  { %36 = dma.hbm_to_vmem [thread:$0]  %s796_s1, 512, %s31_s25, [#allocation5], %s657_s11, %s657_s11, %s658_s12  }
  0x13   :  { %s659_s15 = smov [#allocation2]   ;;  %s660_s17 = smov [#allocation6]  }
  0x14   :  { %s21_s16 = sshll.u32 %s659_s15, 4  ;;  %s44_s18 = sshll.u32 %s660_s17, 4  ;;  %s22_s16 = int_to_ptr.vmem [resolvable:$true] %s21_s16  ;;  %s45_s18 = int_to_ptr.vmem [resolvable:$true] %s44_s18 }
  0x15   :  { %s584_s21 = scalar_lea.hbm %s795_s0, 128 }
  0x16   :  { %p585_p8 = scmp.ne.s32.totalorder %s795_s0, %s584_s21  ;;  %p588_p9 = scmp.lt.u32.totalorder %s584_s21, %s795_s0 }
  0x18   :  { %p590_p10 = pnand %p588_p9, %p585_p8 }
  0x1a   :  { %593 = shalt.err (!%p590_p10)
}
  0x1b   :  { %s594_s1 = scalar_lea.vmem %s22_s16, 128  ;;  %p599_p12 = scmp.lt.s32.totalorder %s22_s16, %s22_s16 }
  0x1c   :  { %p595_p11 = scmp.ne.s32.totalorder %s22_s16, %s594_s1  ;;  %p600_p13 = scmp.lt.s32.totalorder %s594_s1, %s594_s1 }
  0x1e   :  { %p601_p0 = por %p600_p13, %p599_p12 }
  0x20   :  { %p602_p1 = pnand %p601_p0, %p595_p11 }
  0x22   :  { %605 = shalt.err (!%p602_p1)
}
  0x23   :  { %24 = dma.hbm_to_vmem [thread:$0]  %s795_s0, 128, %s22_s16, [#allocation3]  }
  0x24   :  { %s606_s30 = scalar_lea.hbm %s798_s3, 2048 }
  0x25   :  { %p607_p2 = scmp.ne.s32.totalorder %s798_s3, %s606_s30  ;;  %p610_p3 = scmp.lt.u32.totalorder %s606_s30, %s798_s3 }
  0x27   :  { %p612_p4 = pnand %p610_p3, %p607_p2 }
  0x29   :  { %615 = shalt.err (!%p612_p4)
}
  0x2a   :  { %s616_s14 = scalar_lea.vmem %s45_s18, 2048  ;;  %p621_p6 = scmp.lt.s32.totalorder %s45_s18, %s45_s18 }
  0x2b   :  { %p617_p5 = scmp.ne.s32.totalorder %s45_s18, %s616_s14  ;;  %p622_p7 = scmp.lt.s32.totalorder %s616_s14, %s616_s14 }
  0x2d   :  { %p623_p8 = por %p622_p7, %p621_p6 }
  0x2f   :  { %p624_p9 = pnand %p623_p8, %p617_p5 }
  0x31   :  { %627 = shalt.err (!%p624_p9)
}
  0x32   :  { %50 = dma.hbm_to_vmem [thread:$0]  %s798_s3, 2048, %s45_s18, [#allocation5], %s657_s11, %s657_s11, %s658_s12  }
  0x33   :  { %s661_s16 = smov [#allocation7]   ;;  %s628_s21 = scalar_lea.hbm %s800_s5, 2048 }
  0x34   :  { %s58_s17 = sshll.u32 %s661_s16, 4  ;;  %p629_p10 = scmp.ne.s32.totalorder %s800_s5, %s628_s21  ;;  %s59_s17 = int_to_ptr.vmem [resolvable:$true] %s58_s17 }
  0x35   :  { %p632_p11 = scmp.lt.u32.totalorder %s628_s21, %s800_s5 }
  0x37   :  { %p634_p12 = pnand %p632_p11, %p629_p10 }
  0x39   :  { %637 = shalt.err (!%p634_p12)
}
  0x3a   :  { %s638_s1 = scalar_lea.vmem %s59_s17, 2048  ;;  %p643_p0 = scmp.lt.s32.totalorder %s59_s17, %s59_s17 }
  0x3b   :  { %p639_p13 = scmp.ne.s32.totalorder %s59_s17, %s638_s1  ;;  %p644_p1 = scmp.lt.s32.totalorder %s638_s1, %s638_s1 }
  0x3d   :  { %p645_p2 = por %p644_p1, %p643_p0 }
  0x3f   :  { %p646_p3 = pnand %p645_p2, %p639_p13 }
  0x41   :  { %649 = shalt.err (!%p646_p3)
}
  0x42   :  { %64 = dma.hbm_to_vmem [thread:$0]  %s800_s5, 2048, %s59_s17, [#allocation8], %s657_s11, %s657_s11, %s658_s12  }
  0x43   :  { %650 = dma.done.wait [#allocation3], 128  }
  0x44   :  { %651 = vsyncadd [#allocation3], 4294967168 }
  0x45   :  { %652 = dma.done.wait [#allocation5], 2560  }
  0x46   :  { %653 = vsyncadd [#allocation5], 4294964736 }
  0x47   :  { %654 = dma.done.wait [#allocation8], 2048  }
  0x48   :  { %655 = vsyncadd [#allocation8], 4294965248  ;;  %v662_v0 = vmov 0.0|0.0   ;;  %vm663_vm0 = vmmov 0   ;;  %v664_v1 = vmov 0.0   ;;  %v80_v2 = vld [vmem:[#allocation4] sm:$0xff] }
  0x49   :  { %495 = vmatprep.subr.bf16.mxu0 %v662_v0  ;;  %422 = vmatprep.mubr.msk.f32.mxu0 %vm663_vm0, %v664_v1  ;;  %v81_v3 = vld [vmem:[#allocation4 + $0x8] sm:$0xff]  ;;  %v82_v4 = vld [vmem:[#allocation4 + $0x10] sm:$0xff]  ;;  %v83_v6 = vld [vmem:[#allocation4 + $0x18] sm:$0xff]  ;;  %vm91_vm1 = vcmask 261120   ;;  %vm362_vm2 = vcmask 31744  }
  0x4a   :  { %501 = vmatprep.subr.bf16.mxu1 %v662_v0  ;;  %457 = vmatprep.mubr.msk.f32.mxu1 %vm663_vm0, %v664_v1  ;;  %v496_v5 = vpack.c.bf16 %v81_v3, %v80_v2  ;;  %v166_v7 = vld [vmem:[#allocation6] sm:$0xff]  ;;  %v167_v8 = vld [vmem:[#allocation6 + $0x8] sm:$0xff]  ;;  %v168_v9 = vld [vmem:[#allocation6 + $0x10] sm:$0xff]  ;;  %v499_v11 = vpack.c.bf16 %v83_v6, %v82_v4 }
  0x4b   :  { %v169_v10 = vld [vmem:[#allocation6 + $0x18] sm:$0xff]  ;;  %v502_v12 = vpack.c.bf16 %v167_v8, %v166_v7  ;;  %v170_v14 = vld [vmem:[#allocation6 + $0x20] sm:$0xff]  ;;  %v171_v15 = vld [vmem:[#allocation6 + $0x28] sm:$0xff] }
  0x4c   :  { %497 = vmatpush3.bf16.msra.mxu0 %v496_v5  ;;  %v505_v13 = vpack.c.bf16 %v169_v10, %v168_v9  ;;  %v79_v16 = vld [vmem:[#allocation2] sm:$0xff]  ;;  %v508_v17 = vpack.c.bf16 %v171_v15, %v170_v14  ;;  %v172_v18 = vld [vmem:[#allocation6 + $0x30] sm:$0xff]  ;;  %v174_v21 = vld [vmem:[#allocation6 + $0x40] sm:$0xff] }
  0x4d   :  { %498 = vmatprep.subr.bf16.mxu0 %v662_v0  ;;  %503 = vmatpush3.bf16.msra.mxu1 %v502_v12  ;;  %v173_v19 = vld [vmem:[#allocation6 + $0x38] sm:$0xff]  ;;  %v175_v22 = vld [vmem:[#allocation6 + $0x48] sm:$0xff]  ;;  %v176_v24 = vld [vmem:[#allocation6 + $0x50] sm:$0xff] }
  0x4e   :  { %504 = vmatprep.subr.bf16.mxu1 %v662_v0  ;;  %v511_v20 = vpack.c.bf16 %v173_v19, %v172_v18  ;;  %v514_v23 = vpack.c.bf16 %v175_v22, %v174_v21  ;;  %v177_v25 = vld [vmem:[#allocation6 + $0x58] sm:$0xff]  ;;  %v178_v27 = vld [vmem:[#allocation6 + $0x60] sm:$0xff]  ;;  %v179_v28 = vld [vmem:[#allocation6 + $0x68] sm:$0xff] }
  0x4f   :  { %v517_v26 = vpack.c.bf16 %v177_v25, %v176_v24  ;;  %v520_v29 = vpack.c.bf16 %v179_v28, %v178_v27  ;;  %v180_v30 = vld [vmem:[#allocation6 + $0x70] sm:$0xff]  ;;  %v181_v31 = vld [vmem:[#allocation6 + $0x78] sm:$0xff]  ;;  %v260_v33 = vld [vmem:[#allocation7] sm:$0xff] }
  0x50   :  { %500 = vmatpush3.bf16.msra.mxu0 %v499_v11  ;;  %v523_v32 = vpack.c.bf16 %v181_v31, %v180_v30  ;;  %v261_v34 = vld [vmem:[#allocation7 + $0x8] sm:$0xff]  ;;  %v262_v35 = vld [vmem:[#allocation7 + $0x10] sm:$0xff]  ;;  %v263_v37 = vld [vmem:[#allocation7 + $0x18] sm:$0xff] }
  0x51   :  { %525 = vmatprep.subr.bf16.mxu0 %v662_v0  ;;  %506 = vmatpush3.bf16.msra.mxu1 %v505_v13  ;;  %v526_v36 = vpack.c.bf16 %v261_v34, %v260_v33  ;;  %v529_v38 = vpack.c.bf16 %v263_v37, %v262_v35  ;;  %v264_v39 = vld [vmem:[#allocation7 + $0x20] sm:$0xff]  ;;  %v265_v40 = vld [vmem:[#allocation7 + $0x28] sm:$0xff]  ;;  %v266_v42 = vld [vmem:[#allocation7 + $0x30] sm:$0xff] }
  0x52   :  { %507 = vmatprep.subr.bf16.mxu1 %v662_v0  ;;  %v532_v41 = vpack.c.bf16 %v265_v40, %v264_v39  ;;  %v267_v43 = vld [vmem:[#allocation7 + $0x38] sm:$0xff]  ;;  %v268_v45 = vld [vmem:[#allocation7 + $0x40] sm:$0xff]  ;;  %v269_v46 = vld [vmem:[#allocation7 + $0x48] sm:$0xff] }
  0x53   :  { %423 = vmatmul.mubr.msk.f32.vlgmr.msra.gmra.mrb[0].mxu0 %vm91_vm1, %v79_v16  ;;  %v535_v44 = vpack.c.bf16 %v267_v43, %v266_v42  ;;  %v538_v47 = vpack.c.bf16 %v269_v46, %v268_v45  ;;  %v270_v48 = vld [vmem:[#allocation7 + $0x50] sm:$0xff]  ;;  %v271_v49 = vld [vmem:[#allocation7 + $0x58] sm:$0xff]  ;;  %v272_v51 = vld [vmem:[#allocation7 + $0x60] sm:$0xff] }
  0x54   :  { %492 = vmatprep.mubr.msk.f32.mxu0 %vm663_vm0, %v664_v1  ;;  %527 = vmatpush3.bf16.msra.mxu0 %v526_v36  ;;  %v541_v50 = vpack.c.bf16 %v271_v49, %v270_v48  ;;  %v273_v52 = vld [vmem:[#allocation7 + $0x68] sm:$0xff]  ;;  %v371_v54 = vld [vmem:[%s797_s2] ss:$0 sm:$0xff]  ;;  %v274_v59 = vld [vmem:[#allocation7 + $0x70] sm:$0xff] }
  0x55   :  { %509 = vmatpush3.bf16.msra.mxu1 %v508_v17  ;;  %528 = vmatprep.subr.bf16.mxu0 %v662_v0  ;;  %v544_v53 = vpack.c.bf16 %v273_v52, %v272_v51  ;;  %v275_v60 = vld [vmem:[#allocation7 + $0x78] sm:$0xff] }
  0x56   :  { %510 = vmatprep.subr.bf16.mxu1 %v662_v0  ;;  %v547_v61 = vpack.c.bf16 %v275_v60, %v274_v59  ;;  %v373_v62 = vld [vmem:[%s799_s4] ss:$0 sm:$0xff] }
  0x57   :  { %v374_v3 = vld [vmem:[%s801_s6] ss:$0 sm:$0xff] }
  0x58   :  { %530 = vmatpush3.bf16.msra.mxu0 %v529_v38 }
  0x59   :  { %512 = vmatpush3.bf16.msra.mxu1 %v511_v20  ;;  %531 = vmatprep.subr.bf16.mxu0 %v662_v0 }
  0x5a   :  { %513 = vmatprep.subr.bf16.mxu1 %v662_v0 }
  0x5c   :  { %533 = vmatpush3.bf16.msra.mxu0 %v532_v41 }
  0x5d   :  { %515 = vmatpush3.bf16.msra.mxu1 %v514_v23  ;;  %534 = vmatprep.subr.bf16.mxu0 %v662_v0 }
  0x5e   :  { %516 = vmatprep.subr.bf16.mxu1 %v662_v0 }
  0x60   :  { %536 = vmatpush3.bf16.msra.mxu0 %v535_v44 }
  0x61   :  { %518 = vmatpush3.bf16.msra.mxu1 %v517_v26  ;;  %537 = vmatprep.subr.bf16.mxu0 %v662_v0 }
  0x62   :  { %519 = vmatprep.subr.bf16.mxu1 %v662_v0 }
  0x64   :  { %539 = vmatpush3.bf16.msra.mxu0 %v538_v47 }
  0x65   :  { %521 = vmatpush3.bf16.msra.mxu1 %v520_v29  ;;  %540 = vmatprep.subr.bf16.mxu0 %v662_v0 }
  0x66   :  { %522 = vmatprep.subr.bf16.mxu1 %v662_v0 }
  0x68   :  { %542 = vmatpush3.bf16.msra.mxu0 %v541_v50 }
  0x69   :  { %524 = vmatpush3.bf16.msra.mxu1 %v523_v32  ;;  %543 = vmatprep.subr.bf16.mxu0 %v662_v0 }
  0x6c   :  { %545 = vmatpush3.bf16.msra.mxu0 %v544_v53 }
  0x6d   :  { %546 = vmatprep.subr.bf16.mxu0 %v662_v0 }
  0x70   :  { %548 = vmatpush3.bf16.msra.mxu0 %v547_v61 }
 0x126   :  { %v161_v55 = vpop.f32.mrb[0].mxu0 }
 0x127   :  { %v162_v56 = vadd.f32 %v371_v54, %v161_v55  ;;  %v424_v57 = vpop.f32.mrb[1].mxu0 }
 0x129   :  { %v165_v58 = vmax.f32 %v162_v56, 0.0 }
 0x12b   :  { %458 = vmatmul.mubr.f32.vlgmr.msra.gmra.mrb[0].mxu1 %v165_v58 }
 0x1fe   :  { %v255_v63 = vpop.f32.mrb[0].mxu1 }
 0x1ff   :  { %v256_v1 = vadd.f32 %v373_v62, %v255_v63  ;;  %v459_v0 = vpop.f32.mrb[1].mxu1 }
 0x201   :  { %v259_v2 = vmax.f32 %v256_v1, 0.0 }
 0x203   :  { %493 = vmatmul.mubr.f32.vlgmr.msra.gmra.mrb[2].mxu0 %v259_v2 }
 0x2d6   :  { %v349_v4 = vpop.f32.mrb[2].mxu0 }
 0x2d7   :  { %v350_v5 = vadd.f32 %v374_v3, %v349_v4  ;;  %v494_v6 = vpop.f32.mrb[3].mxu0 }
 0x2d9   :  { %353 = vmax.xlane.f32.xlu0 %v350_v5 }
 0x366   :  { %v354_v7 = vpop.xlane.xlu0 %353 }
 0x367   :  { %v355_v8 = vsub.f32 %v350_v5, %v354_v7 }
 0x369   :  { %v356_v9 = vmul.f32 1.442695, %v355_v8 }
 0x36b   :  { %558 = vpow2.f32 %v356_v9 }
 0x375   :  { %v559_v10 = vpop.eup %558 }
 0x376   :  { %358 = vadd.xlane.f32.xlu0 %v559_v10 }
 0x403   :  { %v359_v11 = vpop.xlane.xlu0 %358 }
 0x404   :  { %560 = vrcp.f32 %v359_v11 }
 0x40e   :  { %v561_v12 = vpop.eup %560 }
 0x40f   :  { %v361_v13 = vmul.f32 %v561_v12, %v559_v10 }
 0x411   :  { %363 = vst.msk [vmem:[%s802_s7] sm:$0xff] %vm362_vm2, %v361_v13 }
 0x412   :  { %368 = vsyncpa [#allocation3], 1 }
 0x413   :  { %369 = vsyncpa [#allocation5], 1 }
 0x414   :  { %370 = vsyncpa [#allocation8], 1 }

</bundles_post_ra>
